<compile_context>
chip_gen: v7x
topology: tpu7x:2x2x1
jax: 0.10.0
libtpu: 0.0.40
codegen_flags: <defaults>
</compile_context>

<pallas_src>
import functools
import math

import jax
import jax.numpy as jnp
from jax import lax
from jax.experimental import pallas as pl
from jax.experimental.pallas import tpu as pltpu

NEG_INF = -10000000.0  # matches torch.tensor(-10000000.0)


def _causal_attn_kernel(q_in_ref, k_in_ref, v_in_ref,
                        wqT_ref, bq_ref, wkT_ref, bk_ref, wvT_ref, bv_ref,
                        ctx_ref, attn_ref, *, scale, use_bf16):
    j = pl.program_id(1)                 # query-tile index
    S = k_in_ref.shape[0]                # full key/sequence length
    TQ = q_in_ref.shape[0]               # query tile length
    f32 = jnp.float32

    if use_bf16:
        def mx(a):                        # MXU operand cast (accumulation stays f32)
            return a.astype(jnp.bfloat16)
    else:
        def mx(a):
            return a

    # Linear projections; weights are pre-transposed on the host: x @ W^T == x @ WT.
    q = jnp.dot(mx(q_in_ref[...]), mx(wqT_ref[...]),
                preferred_element_type=f32) + bq_ref[...]
    k = jnp.dot(mx(k_in_ref[...]), mx(wkT_ref[...]),
                preferred_element_type=f32) + bk_ref[...]
    v = jnp.dot(mx(v_in_ref[...]), mx(wvT_ref[...]),
                preferred_element_type=f32) + bv_ref[...]

    # Fold the 1/sqrt(H) scale into q:  scale * (k @ q^T) == k @ (scale*q)^T.
    q = q * f32(scale)

    # scores[s, t_local] = <k[s], q[t_local]> — contract hidden dim of both,
    # no explicit transpose materialized.
    scores = lax.dot_general(mx(k), mx(q),
                             dimension_numbers=(((1,), (1,)), ((), ())),
                             preferred_element_type=f32)          # (S, TQ)

    # Causal mask for this query tile: keep key index s <= global query index t.
    s_idx = lax.broadcasted_iota(jnp.int32, (S, TQ), 0)
    t_idx = j * TQ + lax.broadcasted_iota(jnp.int32, (S, TQ), 1)
    scores = jnp.where(s_idx <= t_idx, scores, f32(NEG_INF))

    # Softmax over the key axis (torch Softmax(dim=1)); math stays in f32.
    m = jnp.max(scores, axis=0, keepdims=True)
    e = jnp.exp(scores - m)
    attn = e * pl.reciprocal(jnp.sum(e, axis=0, keepdims=True), approx=True)

    attn_ref[...] = attn.astype(attn_ref.dtype)

    # ctx[t, h] = sum_s attn[s, t] * v[s, h] — contract dim 0 of both, no transpose.
    ctx = lax.dot_general(mx(attn), mx(v),
                          dimension_numbers=(((0,), (0,)), ((), ())),
                          preferred_element_type=f32)             # (TQ, Hp)
    ctx_ref[...] = ctx.astype(ctx_ref.dtype)


def _round_up(x, m):
    return ((x + m - 1) // m) * m


def _pick_tq(S):
    # Largest lane-dense query tile that divides S; tiny/odd sequences fall back to
    # the full query axis per step (block == full array dim is always legal).
    for cand in (512, 256, 128):
        if S % cand == 0:
            return cand
    return S


def causal_scaled_dot_attention(queries, keys, values, params, *, use_bf16=False):
    """Pallas forward. Returns (context (B,S,H), attention_weights (B,S,S))."""
    B, S, H = keys.shape
    assert queries.shape == (B, S, H), "kernel assumes k == seq_len (torch mask requires it)"

    # Lane-dense hidden: pad H up to a multiple of 128 with zeros. Zero-padded
    # weight rows/cols + zero biases leave q/k/v/scores/attn unchanged; padded ctx
    # lanes are exactly zero and get sliced off below.
    Hp = max(_round_up(H, 128), 128)
    pad_h = Hp - H

    def pad_x(x):
        return jnp.pad(x, ((0, 0), (0, 0), (0, pad_h))) if pad_h else x

    def pad_w(wT):  # pre-transposed (in, out) weight
        return jnp.pad(wT, ((0, pad_h), (0, pad_h))) if pad_h else wT

    def pad_b(b):
        return (jnp.pad(b, ((0, pad_h),)) if pad_h else b).reshape(1, Hp)

    q_p, k_p, v_p = pad_x(queries), pad_x(keys), pad_x(values)
    wqT, wkT, wvT = pad_w(params["wq"].T), pad_w(params["wk"].T), pad_w(params["wv"].T)
    bq, bk, bv = pad_b(params["bq"]), pad_b(params["bk"]), pad_b(params["bv"])

    TQ = _pick_tq(S)
    grid = (B, S // TQ)
    scale = 1.0 / math.sqrt(H)            # based on the ORIGINAL hidden size

    kernel = functools.partial(_causal_attn_kernel, scale=scale, use_bf16=use_bf16)

    q_spec = pl.BlockSpec((None, TQ, Hp), lambda b, j: (b, j, 0))
    kv_spec = pl.BlockSpec((None, S, Hp), lambda b, j: (b, 0, 0))   # constant in j -> no re-DMA
    w_spec = pl.BlockSpec((Hp, Hp), lambda b, j: (0, 0))
    b_spec = pl.BlockSpec((1, Hp), lambda b, j: (0, 0))
    ctx_spec = pl.BlockSpec((None, TQ, Hp), lambda b, j: (b, j, 0))
    attn_spec = pl.BlockSpec((None, S, TQ), lambda b, j: (b, 0, j))

    ctx_p, attn = pl.pallas_call(
        kernel,
        out_shape=(jax.ShapeDtypeStruct((B, S, Hp), jnp.float32),
                   jax.ShapeDtypeStruct((B, S, S), jnp.float32)),
        grid=grid,
        in_specs=[q_spec, kv_spec, kv_spec,
                  w_spec, b_spec, w_spec, b_spec, w_spec, b_spec],
        out_specs=(ctx_spec, attn_spec),
        compiler_params=pltpu.CompilerParams(
            dimension_semantics=("parallel", "parallel")),
    )(q_p, k_p, v_p, wqT, bq, wkT, bk, wvT, bv)

    ctx = ctx_p[..., :H] if pad_h else ctx_p
    return ctx, attn


def _reference(queries, keys, values, params):
    """Pure-JAX reference mirroring the PyTorch forward."""
    B, S, H = keys.shape
    q = queries @ params["wq"].T + params["bq"]
    k = keys @ params["wk"].T + params["bk"]
    v = values @ params["wv"].T + params["bv"]
    scale = 1.0 / jnp.sqrt(jnp.float32(H))
    scores = scale * jnp.einsum("bsh,bth->bst", k, q)
    row = lax.broadcasted_iota(jnp.int32, (S, S), 0)
    col = lax.broadcasted_iota(jnp.int32, (S, S), 1)
    scores = jnp.where((row <= col)[None], scores, NEG_INF)
    attn = jax.nn.softmax(scores, axis=1)
    ctx = jnp.einsum("bst,bsh->bth", attn, v)
    return ctx, attn


def _init_params(key, hidden_size):
    """Deterministic synthetic weights (nn.Linear(H, H) shapes)."""
    ks = jax.random.split(key, 6)
    bound = 1.0 / jnp.sqrt(jnp.float32(hidden_size))
    u = lambda k, shape: jax.random.uniform(k, shape, jnp.float32, -bound, bound)
    return {
        "wq": u(ks[0], (hidden_size, hidden_size)), "bq": u(ks[1], (hidden_size,)),
        "wk": u(ks[2], (hidden_size, hidden_size)), "bk": u(ks[3], (hidden_size,)),
        "wv": u(ks[4], (hidden_size, hidden_size)), "bv": u(ks[5], (hidden_size,)),
    }


if __name__ == "__main__":
    B, S, H = 2, 8, 32
    root = jax.random.PRNGKey(0)
    kp, kq, kk, kv = jax.random.split(root, 4)
    params = _init_params(kp, H)
    queries = jax.random.normal(kq, (B, S, H), jnp.float32)
    keys = jax.random.normal(kk, (B, S, H), jnp.float32)
    values = jax.random.normal(kv, (B, S, H), jnp.float32)

    ctx_ref, attn_ref = _reference(queries, keys, values, params)

    # f32 MXU-operand path (exact semantics; only approx-reciprocal differs).
    ctx, attn = causal_scaled_dot_attention(queries, keys, values, params)
    ctx = jax.block_until_ready(ctx)
    attn = jax.block_until_ready(attn)
    assert ctx.shape == (B, S, H) and attn.shape == (B, S, S)
    assert jnp.allclose(ctx, ctx_ref, atol=5e-3, rtol=5e-3)
    assert jnp.allclose(attn, attn_ref, atol=5e-3, rtol=5e-3)

    # bf16 MXU-operand path (v6e/v7x fast path); f32 accumulation + f32 softmax math,
    # tolerance deliberately relaxed for bf16 operands.
    ctx_bf, attn_bf = causal_scaled_dot_attention(queries, keys, values, params,
                                                  use_bf16=True)
    ctx_bf = jax.block_until_ready(ctx_bf)
    attn_bf = jax.block_until_ready(attn_bf)
    assert jnp.allclose(ctx_bf, ctx_ref, atol=5e-2, rtol=5e-2)
    assert jnp.allclose(attn_bf, attn_ref, atol=5e-2, rtol=5e-2)

    print("KERNEL_OK")
</pallas_src>

<mosaic_0001>
module attributes {stable_mosaic.version = 11 : i64} {
  func.func @_causal_attn_kernel(%arg0: i32, %arg1: i32, %arg2: memref<1x8x128xf32, #tpu.memory_space<vmem>>, %arg3: memref<1x8x128xf32, #tpu.memory_space<vmem>>, %arg4: memref<1x8x128xf32, #tpu.memory_space<vmem>>, %arg5: memref<128x128xf32, #tpu.memory_space<vmem>>, %arg6: memref<1x128xf32, #tpu.memory_space<vmem>>, %arg7: memref<128x128xf32, #tpu.memory_space<vmem>>, %arg8: memref<1x128xf32, #tpu.memory_space<vmem>>, %arg9: memref<128x128xf32, #tpu.memory_space<vmem>>, %arg10: memref<1x128xf32, #tpu.memory_space<vmem>>, %arg11: memref<1x8x128xf32, #tpu.memory_space<vmem>>, %arg12: memref<1x8x8xf32, #tpu.memory_space<vmem>>) attributes {dimension_semantics = [#tpu.dimension_semantics<parallel>, #tpu.dimension_semantics<parallel>], iteration_bounds = array<i64: 2, 1>, scalar_prefetch = 0 : i64, scratch_operands = 0 : i64, tpu.core_type = #tpu.core_type<tc>, window_params = [{transform_indices = @transform_0, window_bounds = array<i64: 1, 8, 128>}, {transform_indices = @transform_1, window_bounds = array<i64: 1, 8, 128>}, {transform_indices = @transform_2, window_bounds = array<i64: 1, 8, 128>}, {pipeline_mode = #tpu.pipeline_mode<synchronous>, transform_indices = @transform_3, window_bounds = array<i64: 128, 128>}, {pipeline_mode = #tpu.pipeline_mode<synchronous>, transform_indices = @transform_4, window_bounds = array<i64: 1, 128>}, {pipeline_mode = #tpu.pipeline_mode<synchronous>, transform_indices = @transform_5, window_bounds = array<i64: 128, 128>}, {pipeline_mode = #tpu.pipeline_mode<synchronous>, transform_indices = @transform_6, window_bounds = array<i64: 1, 128>}, {pipeline_mode = #tpu.pipeline_mode<synchronous>, transform_indices = @transform_7, window_bounds = array<i64: 128, 128>}, {pipeline_mode = #tpu.pipeline_mode<synchronous>, transform_indices = @transform_8, window_bounds = array<i64: 1, 128>}, {transform_indices = @transform_9, window_bounds = array<i64: 1, 8, 128>}, {transform_indices = @transform_10, window_bounds = array<i64: 1, 8, 8>}]} {
    %c0 = arith.constant 0 : index
    %c0_0 = arith.constant 0 : index
    %c0_1 = arith.constant 0 : index
    %0 = vector.load %arg2[%c0, %c0_0, %c0_1] : memref<1x8x128xf32, #tpu.memory_space<vmem>>, vector<1x8x128xf32>
    %1 = vector.shape_cast %0 : vector<1x8x128xf32> to vector<8x128xf32>
    %c0_2 = arith.constant 0 : index
    %c0_3 = arith.constant 0 : index
    %2 = vector.load %arg5[%c0_2, %c0_3] : memref<128x128xf32, #tpu.memory_space<vmem>>, vector<128x128xf32>
    %cst = arith.constant dense<0.000000e+00> : vector<8x128xf32>
    %3 = tpu.matmul %1, %2, %cst {dimension_numbers = #tpu.dot_dimension_numbers<[1], [0], [0], [1], [0, 0, 1, 1], [], []>} : vector<8x128xf32>, vector<128x128xf32>, vector<8x128xf32> -> vector<8x128xf32>
    %c0_4 = arith.constant 0 : index
    %c0_5 = arith.constant 0 : index
    %4 = vector.load %arg6[%c0_4, %c0_5] : memref<1x128xf32, #tpu.memory_space<vmem>>, vector<1x128xf32>
    %5 = vector.broadcast %4 : vector<1x128xf32> to vector<8x128xf32>
    %6 = arith.addf %3, %5 : vector<8x128xf32>
    %c0_6 = arith.constant 0 : index
    %c0_7 = arith.constant 0 : index
    %c0_8 = arith.constant 0 : index
    %7 = vector.load %arg3[%c0_6, %c0_7, %c0_8] : memref<1x8x128xf32, #tpu.memory_space<vmem>>, vector<1x8x128xf32>
    %8 = vector.shape_cast %7 : vector<1x8x128xf32> to vector<8x128xf32>
    %c0_9 = arith.constant 0 : index
    %c0_10 = arith.constant 0 : index
    %9 = vector.load %arg7[%c0_9, %c0_10] : memref<128x128xf32, #tpu.memory_space<vmem>>, vector<128x128xf32>
    %cst_11 = arith.constant dense<0.000000e+00> : vector<8x128xf32>
    %10 = tpu.matmul %8, %9, %cst_11 {dimension_numbers = #tpu.dot_dimension_numbers<[1], [0], [0], [1], [0, 0, 1, 1], [], []>} : vector<8x128xf32>, vector<128x128xf32>, vector<8x128xf32> -> vector<8x128xf32>
    %c0_12 = arith.constant 0 : index
    %c0_13 = arith.constant 0 : index
    %11 = vector.load %arg8[%c0_12, %c0_13] : memref<1x128xf32, #tpu.memory_space<vmem>>, vector<1x128xf32>
    %12 = vector.broadcast %11 : vector<1x128xf32> to vector<8x128xf32>
    %13 = arith.addf %10, %12 : vector<8x128xf32>
    %c0_14 = arith.constant 0 : index
    %c0_15 = arith.constant 0 : index
    %c0_16 = arith.constant 0 : index
    %14 = vector.load %arg4[%c0_14, %c0_15, %c0_16] : memref<1x8x128xf32, #tpu.memory_space<vmem>>, vector<1x8x128xf32>
    %15 = vector.shape_cast %14 : vector<1x8x128xf32> to vector<8x128xf32>
    %c0_17 = arith.constant 0 : index
    %c0_18 = arith.constant 0 : index
    %16 = vector.load %arg9[%c0_17, %c0_18] : memref<128x128xf32, #tpu.memory_space<vmem>>, vector<128x128xf32>
    %cst_19 = arith.constant dense<0.000000e+00> : vector<8x128xf32>
    %17 = tpu.matmul %15, %16, %cst_19 {dimension_numbers = #tpu.dot_dimension_numbers<[1], [0], [0], [1], [0, 0, 1, 1], [], []>} : vector<8x128xf32>, vector<128x128xf32>, vector<8x128xf32> -> vector<8x128xf32>
    %c0_20 = arith.constant 0 : index
    %c0_21 = arith.constant 0 : index
    %18 = vector.load %arg10[%c0_20, %c0_21] : memref<1x128xf32, #tpu.memory_space<vmem>>, vector<1x128xf32>
    %19 = vector.broadcast %18 : vector<1x128xf32> to vector<8x128xf32>
    %20 = arith.addf %17, %19 : vector<8x128xf32>
    %cst_22 = arith.constant 0.176776692 : f32
    %21 = vector.broadcast %cst_22 : f32 to vector<8x128xf32>
    %22 = arith.mulf %6, %21 : vector<8x128xf32>
    %cst_23 = arith.constant dense<0.000000e+00> : vector<8x8xf32>
    %23 = tpu.matmul %13, %22, %cst_23 {dimension_numbers = #tpu.dot_dimension_numbers<[1], [1], [0], [0], [0, 0, 1, 0], [], []>} : vector<8x128xf32>, vector<8x128xf32>, vector<8x8xf32> -> vector<8x8xf32>
    %24 = tpu.iota {dimensions = array<i32: 0>} : vector<8x8xi32>
    %c8_i32 = arith.constant 8 : i32
    %25 = arith.muli %arg1, %c8_i32 : i32
    %26 = tpu.iota {dimensions = array<i32: 1>} : vector<8x8xi32>
    %27 = vector.broadcast %25 : i32 to vector<8x8xi32>
    %28 = arith.addi %27, %26 : vector<8x8xi32>
    %29 = arith.cmpi sle, %24, %28 : vector<8x8xi32>
    %cst_24 = arith.constant -1.000000e+07 : f32
    %30 = vector.broadcast %cst_24 : f32 to vector<8x8xf32>
    %31 = arith.select %29, %23, %30 : vector<8x8xi1>, vector<8x8xf32>
    %cst_25 = arith.constant dense<0xFF800000> : vector<8xf32>
    %32 = vector.multi_reduction <maximumf>, %31, %cst_25 [0] : vector<8x8xf32> to vector<8xf32>
    %33 = vector.shape_cast %32 : vector<8xf32> to vector<1x8xf32>
    %34 = vector.broadcast %33 : vector<1x8xf32> to vector<8x8xf32>
    %35 = arith.subf %31, %34 : vector<8x8xf32>
    %36 = math.exp %35 : vector<8x8xf32>
    %cst_26 = arith.constant dense<0.000000e+00> : vector<8xf32>
    %37 = vector.multi_reduction <add>, %36, %cst_26 [0] : vector<8x8xf32> to vector<8xf32>
    %38 = vector.shape_cast %37 : vector<8xf32> to vector<1x8xf32>
    %39 = tpu.reciprocal %38 {approx = true} : vector<1x8xf32> -> vector<1x8xf32>
    %40 = vector.broadcast %39 : vector<1x8xf32> to vector<8x8xf32>
    %41 = arith.mulf %36, %40 : vector<8x8xf32>
    %c0_27 = arith.constant 0 : index
    %c0_28 = arith.constant 0 : index
    %c0_29 = arith.constant 0 : index
    %42 = vector.load %arg12[%c0_27, %c0_28, %c0_29] : memref<1x8x8xf32, #tpu.memory_space<vmem>>, vector<1x8x8xf32>
    %43 = vector.shape_cast %42 : vector<1x8x8xf32> to vector<8x8xf32>
    %44 = vector.shape_cast %41 : vector<8x8xf32> to vector<1x8x8xf32>
    tpu.vector_store %arg12[%c0_27, %c0_28, %c0_29], %44 {strides = array<i32>} : memref<1x8x8xf32, #tpu.memory_space<vmem>>, vector<1x8x8xf32>,
    %cst_30 = arith.constant dense<0.000000e+00> : vector<8x128xf32>
    %45 = tpu.matmul %41, %20, %cst_30 {dimension_numbers = #tpu.dot_dimension_numbers<[0], [0], [1], [1], [0, 1, 1, 1], [], []>} : vector<8x8xf32>, vector<8x128xf32>, vector<8x128xf32> -> vector<8x128xf32>
    %c0_31 = arith.constant 0 : index
    %c0_32 = arith.constant 0 : index
    %c0_33 = arith.constant 0 : index
    %46 = vector.load %arg11[%c0_31, %c0_32, %c0_33] : memref<1x8x128xf32, #tpu.memory_space<vmem>>, vector<1x8x128xf32>
    %47 = vector.shape_cast %46 : vector<1x8x128xf32> to vector<8x128xf32>
    %48 = vector.shape_cast %45 : vector<8x128xf32> to vector<1x8x128xf32>
    tpu.vector_store %arg11[%c0_31, %c0_32, %c0_33], %48 {strides = array<i32>} : memref<1x8x128xf32, #tpu.memory_space<vmem>>, vector<1x8x128xf32>,
    return
  }
  func.func @transform_0(%arg0: i32, %arg1: i32) -> (i32, i32, i32) {
    %c0_i32 = arith.constant 0 : i32
    %c0_i32_0 = arith.constant 0 : i32
    return %arg0, %arg1, %c0_i32 : i32, i32, i32
  }
  func.func @transform_1(%arg0: i32, %arg1: i32) -> (i32, i32, i32) {
    %c0_i32 = arith.constant 0 : i32
    %c0_i32_0 = arith.constant 0 : i32
    %c0_i32_1 = arith.constant 0 : i32
    return %arg0, %c0_i32, %c0_i32_0 : i32, i32, i32
  }
  func.func @transform_2(%arg0: i32, %arg1: i32) -> (i32, i32, i32) {
    %c0_i32 = arith.constant 0 : i32
    %c0_i32_0 = arith.constant 0 : i32
    %c0_i32_1 = arith.constant 0 : i32
    return %arg0, %c0_i32, %c0_i32_0 : i32, i32, i32
  }
  func.func @transform_3(%arg0: i32, %arg1: i32) -> (i32, i32) {
    %c0_i32 = arith.constant 0 : i32
    %c0_i32_0 = arith.constant 0 : i32
    %c0_i32_1 = arith.constant 0 : i32
    return %c0_i32, %c0_i32_0 : i32, i32
  }
  func.func @transform_4(%arg0: i32, %arg1: i32) -> (i32, i32) {
    %c0_i32 = arith.constant 0 : i32
    %c0_i32_0 = arith.constant 0 : i32
    %c0_i32_1 = arith.constant 0 : i32
    return %c0_i32, %c0_i32_0 : i32, i32
  }
  func.func @transform_5(%arg0: i32, %arg1: i32) -> (i32, i32) {
    %c0_i32 = arith.constant 0 : i32
    %c0_i32_0 = arith.constant 0 : i32
    %c0_i32_1 = arith.constant 0 : i32
    return %c0_i32, %c0_i32_0 : i32, i32
  }
  func.func @transform_6(%arg0: i32, %arg1: i32) -> (i32, i32) {
    %c0_i32 = arith.constant 0 : i32
    %c0_i32_0 = arith.constant 0 : i32
    %c0_i32_1 = arith.constant 0 : i32
    return %c0_i32, %c0_i32_0 : i32, i32
  }
  func.func @transform_7(%arg0: i32, %arg1: i32) -> (i32, i32) {
    %c0_i32 = arith.constant 0 : i32
    %c0_i32_0 = arith.constant 0 : i32
    %c0_i32_1 = arith.constant 0 : i32
    return %c0_i32, %c0_i32_0 : i32, i32
  }
  func.func @transform_8(%arg0: i32, %arg1: i32) -> (i32, i32) {
    %c0_i32 = arith.constant 0 : i32
    %c0_i32_0 = arith.constant 0 : i32
    %c0_i32_1 = arith.constant 0 : i32
    return %c0_i32, %c0_i32_0 : i32, i32
  }
  func.func @transform_9(%arg0: i32, %arg1: i32) -> (i32, i32, i32) {
    %c0_i32 = arith.constant 0 : i32
    %c0_i32_0 = arith.constant 0 : i32
    return %arg0, %arg1, %c0_i32 : i32, i32, i32
  }
  func.func @transform_10(%arg0: i32, %arg1: i32) -> (i32, i32, i32) {
    %c0_i32 = arith.constant 0 : i32
    %c0_i32_0 = arith.constant 0 : i32
    return %arg0, %c0_i32, %arg1 : i32, i32, i32
  }
}

</mosaic_0001>

<bundles_post_ra>
// kernel: tpu_custom_call.1
= control target key start
LH: loop header
LB: loop body
LE: loop exit
PB: predicated region body
PF: predicated region fallthrough
CT: control target
= control target key end

     0   :  { %s2412_s0 = inlined_call_operand.hbm [shape: f32[2,8,128], index: 0, kind: input, shape index: {}]   ;;  %s2413_s1 = inlined_call_operand.hbm [shape: f32[2,8,128], index: 1, kind: input, shape index: {}]   ;;  %s2414_s2 = inlined_call_operand.hbm [shape: f32[2,8,128], index: 2, kind: input, shape index: {}]   ;;  %s2415_s3 = inlined_call_operand.hbm [shape: f32[128,128], index: 3, kind: input, shape index: {}]   ;;  %s2416_s4 = inlined_call_operand.vmem [shape: f32[1,128], index: 4, kind: input, shape index: {}]   ;;  %s2417_s5 = inlined_call_operand.hbm [shape: f32[128,128], index: 5, kind: input, shape index: {}]   ;;  %s2418_s6 = inlined_call_operand.vmem [shape: f32[1,128], index: 6, kind: input, shape index: {}]   ;;  %s2419_s7 = inlined_call_operand.hbm [shape: f32[128,128], index: 7, kind: input, shape index: {}]   ;;  %s2420_s8 = inlined_call_operand.vmem [shape: f32[1,128], index: 8, kind: input, shape index: {}]   ;;  %s2421_s9 = inlined_call_operand.hbm [shape: f32[2,8,128], index: 9, kind: output, shape index: {0}]   ;;  %s2422_s10 = inlined_call_operand.hbm [shape: f32[2,8,8], index: 10, kind: output, shape index: {1}]  }
   0x1   :  { %2451 = sst [smem:[#allocation30_spill]] %s2413_s1 }
   0x2   :  { %2452 = sst [smem:[#allocation31_spill]] %s2415_s3 }
   0x3   :  { %2453 = sst [smem:[#allocation32_spill]] %s2418_s6 }
   0x4   :  { %2454 = sst [smem:[#allocation33_spill]] %s2420_s8 }
   0x5   :  { %2455 = sst [smem:[#allocation34_spill]] %s2421_s9 }
   0x6   :  { %2456 = sst [smem:[#allocation35_spill]] %s2422_s10 }
   0x7   :  { %16 = vsyncpa [#allocation3], 0 }
   0x8   :  { %18 = vsyncpa [#allocation3 + $0x1], 0 }
   0x9   :  { %19 = vsyncpa [#allocation6], 0 }
   0xa   :  { %21 = vsyncpa [#allocation6 + $0x1], 0 }
   0xb   :  { %22 = vsyncpa [#allocation9], 0 }
   0xc   :  { %23 = vsyncpa [#allocation12], 0 }
   0xd   :  { %24 = vsyncpa [#allocation4], 0 }
   0xe   :  { %26 = vsyncpa [#allocation4 + $0x1], 0 }
   0xf   :  { %27 = vsyncpa [#allocation15], 0 }
  0x10   :  { %29 = vsyncpa [#allocation15 + $0x1], 0  ;;  %s1989_s13 = smov 0   ;;  %s1991_s14 = smov 0  }
  0x11   :  { %s1993_s15 = smov 0   ;;  %s1995_s16 = smov 0  }
  0x12   :  { %s1997_s17 = smov 0   ;;  %s1999_s18 = smov 0  }
  0x13 LB: > { %2457 = sst [smem:[#allocation22_spill]] %s1899_s13  ;;  %s2020_s19 = sadd.s32 4294967295, %s1919_s18   ;;  %s1919_s18 = sphi %s1999_s18, %s35_s18   ;;  %s1915_s17 = sphi %s1997_s17, %s2504_s17   ;;  %s1911_s16 = sphi %s1995_s16, %s2503_s16   ;;  %s1907_s15 = sphi %s1993_s15, %s2507_s15   ;;  %s1903_s14 = sphi %s1991_s14, %s2506_s14   ;;  %s1899_s13 = sphi %s1989_s13, %s2505_s13  }
  0x14   : > { %2458 = sst [smem:[#allocation23_spill]] %s1911_s16  ;;  %s1229_s20 = sadd.s32 4294967294, %s1919_s18  }
  0x15   : > { %2459 = sst [smem:[#allocation24_spill]] %s1915_s17  ;;  %p69_p0 = scmp.ne.s32.totalorder %s1903_s14, %s1899_s13 }
  0x16   : > { %2460 = sst [smem:[#allocation25_spill]] %s1919_s18  ;;  %p2424_p1 = scmp.eq.s32.totalorder %s2020_s19, 0 }
  0x17   : > { %p279_p3 = scmp.eq.s32.totalorder %s1229_s20, 1  ;;  %p1230_p5 = scmp.ge.s32.totalorder %s1919_s18, 1 }
  0x18   : > { %p2029_p4 = por %p2424_p1, %p69_p0  ;;  %p314_p7 = scmp.lt.s32.totalorder %s1919_s18, 3 }
  0x19   : > { %p2034_p6 = por %p279_p3, %p69_p0  ;;  %s1921_s24 = smov [#allocation8]  }
  0x1a   : > { %s2461_s21 = scalar_select %p2029_p4, 1, 0 }
  0x1b   : > { %s2462_s22 = scalar_select %p2034_p6, 1, 0 }
  0x1c   : > { %p2039_p8 = pnand %p1230_p5, %p314_p7  ;;  %s326_s25 = sshll.u32 %s1921_s24, 4  ;;  %s327_s25 = int_to_ptr.vmem [resolvable:$true] %s326_s25 }
  0x1d   : > { %2463 = sst [smem:[#allocation26_spill]] %s2462_s22  ;;  %s47_s27 = sadd.s32 1, %s1915_s17 }
  0x1e   : > { %s2464_s23 = scalar_select %p2039_p8, 1, 0 }
  0x1f   : > { %p1524_p9 = pneg %p2039_p8  ;;  %s2466_s3 = sld [smem:[#allocation31_spill]] }
  0x21   : > { %p2048_p11 = pnand %p1524_p9, %p2424_p1 }
  0x23   : > { %s2465_s26 = scalar_select %p2048_p11, 1, 0 }
  0x24   : > { %p2061_p13 = pneg %p2048_p11 }
  0x25   : > { %s1619_s30 = scalar_lea.hbm %s2466_s3, 2048 }
  0x26   : > { %p1620_p12 = scmp.ne.s32.totalorder %s2466_s3, %s1619_s30  ;;  %p1626_p5 = scmp.lt.u32.totalorder %s1619_s30, %s2466_s3 }
  0x27   : > { %s2467_s20 = scalar_select %p2061_p13, 1, 0 }
  0x28   : > { %p1622_p0 = pnand %p2061_p13, %p1620_p12 }
  0x2a   : > { %p1623_p3 = pneg %p1622_p0 }
  0x2c   : > { %p1628_p7 = pnand %p1626_p5, %p1623_p3 }
  0x2e   : > { %1631 = shalt.err (!%p1628_p7)
}
  0x2f   : > { %s1632_s28 = scalar_lea.vmem %s327_s25, 2048  ;;  %p1640_p2 = scmp.lt.s32.totalorder %s327_s25, %s327_s25 }
  0x30   : > { %p1633_p9 = scmp.ne.s32.totalorder %s327_s25, %s1632_s28  ;;  %p1641_p6 = scmp.lt.s32.totalorder %s1632_s28, %s1632_s28 }
  0x32   : > { %p1635_p10 = pnand %p1633_p9, %p2061_p13  ;;  %p1642_p4 = por %p1641_p6, %p1640_p2 }
  0x34   : > { %p1636_p1 = pneg %p1635_p10 }
  0x36   : > { %p1643_p8 = pnand %p1642_p4, %p1636_p1 }
  0x38   : > { %1646 = shalt.err (!%p1643_p8)
}
  0x39   : > { %s2428_s29 = smov 128   ;;  %s2430_s22 = smov 8  }
  0x3a   : > { %1527 = dma.hbm_to_vmem [thread:$0]  (!%p2048_p11), %s2466_s3, 2048, %s327_s25, [#allocation9], %s2428_s29, %s2428_s29, %s2430_s22  }
  0x3b   : > { %p49_p1 = scmp.ge.s32.totalorder %s47_s27, 2  ;;  %s56_s12 = sadd.s32 1, %s1907_s15 }
  0x3c   : > { %p63_p2 = scmp.ne.s32.totalorder %s1907_s15, %s1903_s14  ;;  %p64_p4 = scmp.eq.s32.totalorder %s1919_s18, 0 }
  0x3d   : > { %s2509_s27 = smov (%p49_p1, %s47_s27), 0  ;;  %p2469_p8 = scmp.eq.s32.totalorder %s2020_s19, 1 }
  0x3e   : > { %2468 = sst [smem:[#allocation27_spill]] %s2509_s27  ;;  %p65_p6 = por %p64_p4, %p63_p2 }
  0x3f   : > { %p2088_p10 = por %p2469_p8, %p63_p2  ;;  %s51_s28 = ssub.s32 %s1915_s17, %s2509_s27 }
  0x40   : > { %p1554_p12 = scmp.lt.s32.totalorder %s1919_s18, 2  ;;  %p54_p0 = scmp.eq.s32.totalorder %s51_s28, 0 }
  0x41   : > { %s2470_s24 = scalar_select %p2088_p10, 1, 0 }
  0x42   : > { %s2433_s13 = sand.u32 1, %s1907_s15   ;;  %s2101_s30 = sshll.u32 %s1915_s17, 7 }
  0x43   : > { %2471 = sst [smem:[#allocation28_spill]] %s2470_s24  ;;  %s2098_s25 = sshll.u32 %s2433_s13, 3 }
  0x44   : > { %s2104_s11 = scalar_select %p54_p0, %s1907_s15, %s56_s12  }
  0x45   : > { %p2106_p3 = pnand %p1554_p12, %p65_p6  ;;  %s394_s22 = sand.u32 1, %s1919_s18  }
  0x46   : > { %2472 = sst [smem:[#allocation29_spill]] %s2104_s11  ;;  %s398_s13 = scalar_lea.vmem [#allocation5], %s2098_s25 }
  0x47   : > { %s2473_s29 = scalar_select %p2106_p3, 1, 0 }
  0x48   : > { %s2474_s1 = sld [smem:[#allocation30_spill]]  ;;  %s405_s17 = sshll.u32 %s398_s13, 4  ;;  %s2118_s17 = int_to_ptr.vmem [resolvable:$true] %s405_s17 }
  0x49   : > { %s1924_s12 = smov [#allocation10]   ;;  %s2122_s9 = scalar_lea.sflag [#allocation6], %s394_s22 }
  0x4a   : > { %s2120_s11 = sshll.u32 %s1924_s12, 4  ;;  %p2128_p7 = pneg %p2106_p3  ;;  %s343_s11 = int_to_ptr.vmem [resolvable:$true] %s2120_s11 }
  0x4c   : > { %s2475_s3 = scalar_select %p2128_p7, 1, 0 }
  0x4e   : > { %s2115_s28 = scalar_lea.hbm %s2474_s1, %s2101_s30  ;;  %s1652_s18 = scalar_lea.hbm %s2474_s1, 256 }
  0x4f   : > { %s1647_s10 = scalar_lea.hbm %s2115_s28, 128  ;;  %p1653_p2 = scmp.lt.u32.totalorder %s2115_s28, %s2474_s1 }
  0x50   : > { %p1648_p5 = scmp.ne.s32.totalorder %s2115_s28, %s1647_s10  ;;  %p1654_p4 = scmp.lt.u32.totalorder %s1652_s18, %s1647_s10 }
  0x51   : > { %p1656_p8 = scmp.lt.u32.totalorder %s1647_s10, %s2115_s28 }
  0x52   : > { %p1650_p9 = pnand %p2128_p7, %p1648_p5  ;;  %p1655_p6 = por %p1654_p4, %p1653_p2 }
  0x54   : > { %p1651_p1 = pneg %p1650_p9  ;;  %p1657_p12 = por %p1656_p8, %p1655_p6 }
  0x56   : > { %p1658_p0 = pnand %p1657_p12, %p1651_p1 }
  0x58   : > { %1661 = shalt.err (!%p1658_p0)
}
  0x59   : > { %s1662_s22 = scalar_lea.vmem %s2118_s17, 128  ;;  %s1925_s27 = smov [#allocation5]  }
  0x5a   : > { %p1663_p5 = scmp.ne.s32.totalorder %s2118_s17, %s1662_s22  ;;  %s1667_s13 = sshll.u32 %s1925_s27, 4  ;;  %s1668_s13 = int_to_ptr.vmem [resolvable:$false] %s1667_s13 }
  0x5b   : > { %s1669_s24 = scalar_lea.vmem %s1668_s13, 256  ;;  %p1670_p11 = scmp.lt.s32.totalorder %s2118_s17, %s1668_s13 }
  0x5c   : > { %p1665_p9 = pnand %p1663_p5, %p2128_p7  ;;  %p1671_p13 = scmp.lt.s32.totalorder %s1669_s24, %s1662_s22 }
  0x5e   : > { %p1666_p10 = pneg %p1665_p9  ;;  %p1672_p2 = por %p1671_p13, %p1670_p11 }
  0x60   : > { %p1673_p4 = pnand %p1672_p2, %p1666_p10 }
  0x62   : > { %1676 = shalt.err (!%p1673_p4)
}
  0x63   : > { %1540 = dma.hbm_to_vmem [thread:$0]  (!%p2106_p3), %s2115_s28, 128, %s2118_s17, %s2122_s9  }
  0x64   : > { %s1677_s12 = scalar_lea.hbm %s2417_s5, 2048  ;;  %p2476_p11 = scmp.ne.s32.totalorder %s2467_s20, 0 }
  0x65   : > { %p1678_p1 = scmp.ne.s32.totalorder %s2417_s5, %s1677_s12  ;;  %p1684_p6 = scmp.lt.u32.totalorder %s1677_s12, %s2417_s5 }
  0x67   : > { %p1680_p13 = pnand %p1678_p1, %p2476_p11 }
  0x69   : > { %p1681_p10 = pneg %p1680_p13 }
  0x6b   : > { %p1686_p8 = pnand %p1684_p6, %p1681_p10 }
  0x6d   : > { %1689 = shalt.err (!%p1686_p8)
}
  0x6e   : > { %s1690_s24 = scalar_lea.vmem %s343_s11, 2048  ;;  %p1698_p9 = scmp.lt.s32.totalorder %s343_s11, %s343_s11 }
  0x6f   : > { %p1691_p12 = scmp.ne.s32.totalorder %s343_s11, %s1690_s24  ;;  %p1699_p2 = scmp.lt.s32.totalorder %s1690_s24, %s1690_s24 }
  0x71   : > { %p1693_p0 = pnand %p1691_p12, %p2476_p11  ;;  %p1700_p4 = por %p1699_p2, %p1698_p9 }
  0x73   : > { %p1694_p5 = pneg %p1693_p0 }
  0x75   : > { %p1701_p3 = pnand %p1700_p4, %p1694_p5 }
  0x77   : > { %1704 = shalt.err (!%p1701_p3)
}
  0x78   : > { %p2477_p1 = scmp.ne.s32.totalorder %s2465_s26, 0  ;;  %s2478_s1 = smov 8  }
  0x79   : > { %s2479_s17 = smov 128   ;;  %s1926_s18 = smov [#allocation11]  }
  0x7a   : > { %1530 = dma.hbm_to_vmem [thread:$0]  (!%p2477_p1), %s2417_s5, 2048, %s343_s11, [#allocation9], %s2479_s17, %s2479_s17, %s2478_s1  }
  0x7b   : > { %s358_s12 = sshll.u32 %s1926_s18, 4  ;;  %s1705_s13 = scalar_lea.hbm %s2419_s7, 2048  ;;  %s359_s12 = int_to_ptr.vmem [resolvable:$true] %s358_s12 }
  0x7c   : > { %p1706_p3 = scmp.ne.s32.totalorder %s2419_s7, %s1705_s13  ;;  %p1712_p6 = scmp.lt.u32.totalorder %s1705_s13, %s2419_s7 }
  0x7e   : > { %p1708_p13 = pnand %p1706_p3, %p2476_p11 }
  0x80   : > { %p1709_p10 = pneg %p1708_p13 }
  0x82   : > { %p1714_p8 = pnand %p1712_p6, %p1709_p10 }
  0x84   : > { %1717 = shalt.err (!%p1714_p8)
}
  0x85   : > { %s1718_s11 = scalar_lea.vmem %s359_s12, 2048  ;;  %p1726_p9 = scmp.lt.s32.totalorder %s359_s12, %s359_s12 }
  0x86   : > { %p1719_p12 = scmp.ne.s32.totalorder %s359_s12, %s1718_s11  ;;  %p1727_p2 = scmp.lt.s32.totalorder %s1718_s11, %s1718_s11 }
  0x88   : > { %p1721_p0 = pnand %p1719_p12, %p2476_p11  ;;  %p1728_p4 = por %p1727_p2, %p1726_p9 }
  0x8a   : > { %p1722_p5 = pneg %p1721_p0 }
  0x8c   : > { %p1729_p7 = pnand %p1728_p4, %p1722_p5 }
  0x8e   : > { %1732 = shalt.err (!%p1729_p7)
}
  0x8f   : > { %1533 = dma.hbm_to_vmem [thread:$0]  (!%p2477_p1), %s2419_s7, 2048, %s359_s12, [#allocation12], %s2479_s17, %s2479_s17, %s2478_s1  }
  0x90   : > { %s2199_s28 = scalar_lea.hbm %s2412_s0, %s2101_s30  ;;  %s379_s26 = scalar_lea.vmem [#allocation2], %s2098_s25 }
  0x91   : > { %s387_s10 = sshll.u32 %s379_s26, 4  ;;  %s2480_s18 = sand.u32 1, %s1907_s15   ;;  %s388_s10 = int_to_ptr.vmem [resolvable:$true] %s387_s10 }
  0x92   : > { %s376_s27 = scalar_lea.sflag [#allocation3], %s2480_s18  ;;  %s1733_s22 = scalar_lea.hbm %s2199_s28, 128 }
  0x93   : > { %p1734_p7 = scmp.ne.s32.totalorder %s2199_s28, %s1733_s22  ;;  %p2481_p11 = scmp.ne.s32.totalorder %s2475_s3, 0 }
  0x94   : > { %s1738_s12 = scalar_lea.hbm %s2412_s0, 256  ;;  %p1739_p1 = scmp.lt.u32.totalorder %s2199_s28, %s2412_s0 }
  0x95   : > { %p1736_p3 = pnand %p1734_p7, %p2481_p11  ;;  %p1740_p10 = scmp.lt.u32.totalorder %s1738_s12, %s1733_s22 }
  0x96   : > { %p1742_p8 = scmp.lt.u32.totalorder %s1733_s22, %s2199_s28 }
  0x97   : > { %p1737_p13 = pneg %p1736_p3  ;;  %p1741_p6 = por %p1740_p10, %p1739_p1 }
  0x99   : > { %p1743_p12 = por %p1742_p8, %p1741_p6 }
  0x9b   : > { %p1744_p0 = pnand %p1743_p12, %p1737_p13 }
  0x9d   : > { %1747 = shalt.err (!%p1744_p0)
}
  0x9e   : > { %s1748_s11 = scalar_lea.vmem %s388_s10, 128  ;;  %s1927_s6 = smov [#allocation2]  }
  0x9f   : > { %p1749_p5 = scmp.ne.s32.totalorder %s388_s10, %s1748_s11  ;;  %s1753_s8 = sshll.u32 %s1927_s6, 4  ;;  %s1754_s8 = int_to_ptr.vmem [resolvable:$false] %s1753_s8 }
  0xa0   : > { %s1755_s16 = scalar_lea.vmem %s1754_s8, 256  ;;  %p1756_p4 = scmp.lt.s32.totalorder %s388_s10, %s1754_s8 }
  0xa1   : > { %p1751_p9 = pnand %p1749_p5, %p2481_p11  ;;  %p1757_p7 = scmp.lt.s32.totalorder %s1755_s16, %s1748_s11 }
  0xa3   : > { %p1752_p2 = pneg %p1751_p9  ;;  %p1758_p3 = por %p1757_p7, %p1756_p4 }
  0xa5   : > { %p1759_p1 = pnand %p1758_p3, %p1752_p2 }
  0xa7   : > { %1762 = shalt.err (!%p1759_p1)
}
  0xa8   : > { %p2482_p10 = scmp.ne.s32.totalorder %s2473_s29, 0  ;;  %s2225_s18 = scalar_lea.hbm %s2414_s2, %s2101_s30 }
  0xa9   : > { %s416_s22 = scalar_lea.vmem [#allocation7], %s2098_s25  ;;  %s1763_s17 = scalar_lea.hbm %s2225_s18, 128 }
  0xaa   : > { %1537 = dma.hbm_to_vmem [thread:$0]  (!%p2482_p10), %s2199_s28, 128, %s388_s10, %s376_s27  }
  0xab   : > { %s423_s1 = sshll.u32 %s416_s22, 4  ;;  %p1764_p13 = scmp.ne.s32.totalorder %s2225_s18, %s1763_s17  ;;  %s424_s1 = int_to_ptr.vmem [resolvable:$true] %s423_s1 }
  0xac   : > { %s1768_s28 = scalar_lea.hbm %s2414_s2, 256  ;;  %p1769_p12 = scmp.lt.u32.totalorder %s2225_s18, %s2414_s2 }
  0xad   : > { %p1766_p6 = pnand %p1764_p13, %p2481_p11  ;;  %p1770_p0 = scmp.lt.u32.totalorder %s1768_s28, %s1763_s17 }
  0xae   : > { %p1772_p9 = scmp.lt.u32.totalorder %s1763_s17, %s2225_s18 }
  0xaf   : > { %p1767_p8 = pneg %p1766_p6  ;;  %p1771_p5 = por %p1770_p0, %p1769_p12 }
  0xb1   : > { %p1773_p2 = por %p1772_p9, %p1771_p5 }
  0xb3   : > { %p1774_p4 = pnand %p1773_p2, %p1767_p8 }
  0xb5   : > { %1777 = shalt.err (!%p1774_p4)
}
  0xb6   : > { %s1778_s25 = scalar_lea.vmem %s424_s1, 128  ;;  %s1928_s30 = smov [#allocation7]  }
  0xb7   : > { %p1779_p7 = scmp.ne.s32.totalorder %s424_s1, %s1778_s25  ;;  %s1783_s24 = sshll.u32 %s1928_s30, 4  ;;  %s1784_s24 = int_to_ptr.vmem [resolvable:$false] %s1783_s24 }
  0xb8   : > { %s1785_s11 = scalar_lea.vmem %s1784_s24, 256  ;;  %p1786_p13 = scmp.lt.s32.totalorder %s424_s1, %s1784_s24 }
  0xb9   : > { %p1781_p3 = pnand %p1779_p7, %p2481_p11  ;;  %p1787_p6 = scmp.lt.s32.totalorder %s1785_s11, %s1778_s25 }
  0xbb   : > { %p1782_p1 = pneg %p1781_p3  ;;  %p1788_p10 = por %p1787_p6, %p1786_p13 }
  0xbd   : > { %p1789_p0 = pnand %p1788_p10, %p1782_p1 }
  0xbf   : > { %1792 = shalt.err (!%p1789_p0)
}
  0xc0   : > { %p2483_p12 = scmp.ne.s32.totalorder %s2473_s29, 0  ;;  %p2484_p8 = scmp.ne.s32.totalorder %s2464_s23, 0 }
  0xc1   : > { %s2249_s3 = sand.u32 (!%p2484_p8), 1, %s1903_s14   ;;  %p2485_p11 = scmp.ne.s32.totalorder (!%p2484_p8), %s2461_s21, 0 }
  0xc2   : > { %1543 = dma.hbm_to_vmem [thread:$0]  (!%p2483_p12), %s2225_s18, 128, %s424_s1, %s2122_s9  }
  0xc3   : > { %432 = sbr.rel (%p2484_p8) target bundleno = 1089 (0x441), region = 56  ;;  %s2252_s6 = sshll.u32 (!%p2484_p8), %s2249_s3, 3 }
  0xc4   : > { %s435_s8 = scalar_lea.sflag (!%p2484_p8), [#allocation3], %s2249_s3  ;;  %s438_s16 = scalar_lea.vmem (!%p2484_p8), [#allocation2], %s2252_s6 }
  0xca   : > { %1874 = dma.done.wait (%p2485_p11), %s435_s8, 128  }
  0xcb   : > { %1876 = vsyncadd (%p2485_p11), %s435_s8, 4294967168  ;;  %s443_s9 = sand.u32 1, %s2020_s19   ;;  %s447_s29 = scalar_lea.vmem [#allocation5], %s2252_s6 }
  0xcc   : > { %s444_s23 = scalar_lea.sflag [#allocation6], %s443_s9 }
  0xcd   : > { %1878 = dma.done.wait (%p2485_p11), %s444_s23, 256  }
  0xce   : > { %1880 = vsyncadd (%p2485_p11), %s444_s23, 4294967040  ;;  %s456_s20 = scalar_lea.vmem [#allocation7], %s2252_s6  ;;  %p2486_p10 = scmp.eq.s32.totalorder %s2020_s19, 0 }
  0xd0   : > { %1882 = dma.done.wait (%p2486_p10), [#allocation9], 4096   ;;  %p2487_p5 = pmov %p2486_p10 }
  0xd2   : > { %1884 = vsyncadd (%p2487_p5), [#allocation9], 4294963200  ;;  %p2488_p9 = pmov %p2487_p5 }
  0xd3   : > { %p2489_p2 = pmov %p2487_p5 }
  0xd4   : > { %1886 = dma.done.wait (%p2488_p9), [#allocation12], 2048  }
  0xd5   : > { %1888 = vsyncadd (%p2489_p2), [#allocation12], 4294965248  ;;  %v1929_v0 = vmov 0.0|0.0   ;;  %vm1930_vm0 = vmmov 0   ;;  %v1931_v1 = vmov 0.0   ;;  %v521_v2 = vld [vmem:[#allocation8] sm:$0xff] }
  0xd6   : > { %1430 = vmatprep.subr.bf16.mxu0 %v1929_v0  ;;  %1454 = vmatprep.subr.bf16.mxu1 %v1929_v0  ;;  %v522_v3 = vld [vmem:[#allocation8 + $0x8] sm:$0xff]  ;;  %v523_v4 = vld [vmem:[#allocation8 + $0x10] sm:$0xff]  ;;  %v524_v6 = vld [vmem:[#allocation8 + $0x18] sm:$0xff]  ;;  %s2490_s22 = sld [smem:[#allocation32_spill]]  ;;  %s2491_s12 = sld [smem:[#allocation33_spill]]  ;;  %vm882_vm2 = vcmask 64512  }
  0xd7   : > { %1347 = vmatprep.mubr.msk.f32.mxu0 %vm1930_vm0, %v1931_v1  ;;  %1382 = vmatprep.mubr.msk.f32.mxu1 %vm1930_vm0, %v1931_v1  ;;  %v1431_v5 = vpack.c.bf16 %v522_v3, %v521_v2  ;;  %v615_v7 = vld [vmem:[#allocation10] sm:$0xff]  ;;  %v616_v8 = vld [vmem:[#allocation10 + $0x8] sm:$0xff]  ;;  %v617_v10 = vld [vmem:[#allocation10 + $0x10] sm:$0xff]  ;;  %v1434_v11 = vpack.c.bf16 %v524_v6, %v523_v4  ;;  %s2492_s13 = sld [smem:[#allocation23_spill]]  ;;  %s2493_s28 = sld [smem:[#allocation28_spill]] }
  0xd8   : > { %v1455_v9 = vpack.c.bf16 %v616_v8, %v615_v7  ;;  %v618_v12 = vld [vmem:[#allocation10 + $0x18] sm:$0xff]  ;;  %v525_v13 = vld [vmem:[#allocation8 + $0x20] sm:$0xff]  ;;  %v526_v14 = vld [vmem:[#allocation8 + $0x28] sm:$0xff]  ;;  %s519_s10 = scalar_lea.vmem [#allocation14], %s2252_s6  ;;  %s2494_s24 = sld [smem:[#allocation35_spill]] }
  0xd9   : > { %1432 = vmatpush3.bf16.msra.mxu0 %v1431_v5  ;;  %v1458_v15 = vpack.c.bf16 %v618_v12, %v617_v10  ;;  %v619_v16 = vld [vmem:[#allocation10 + $0x20] sm:$0xff]  ;;  %v620_v17 = vld [vmem:[#allocation10 + $0x28] sm:$0xff]  ;;  %v1437_v18 = vpack.c.bf16 %v526_v14, %v525_v13  ;;  %v527_v19 = vld [vmem:[#allocation8 + $0x30] sm:$0xff]  ;;  %s1043_s8 = sshll.u32 %s519_s10, 4  ;;  %s1932_s23 = smov [#allocation14]   ;;  %s1044_s8 = int_to_ptr.vmem [resolvable:$true] %s1043_s8 }
  0xda   : > { %1433 = vmatprep.subr.bf16.mxu0 %v1929_v0  ;;  %1456 = vmatpush3.bf16.msra.mxu1 %v1455_v9  ;;  %v528_v20 = vld [vmem:[#allocation8 + $0x38] sm:$0xff]  ;;  %v1461_v21 = vpack.c.bf16 %v620_v17, %v619_v16  ;;  %v621_v22 = vld [vmem:[#allocation10 + $0x30] sm:$0xff]  ;;  %v529_v25 = vld [vmem:[#allocation8 + $0x40] sm:$0xff]  ;;  %s1793_s9 = scalar_lea.vmem %s1044_s8, 128 }
  0xdb   : > { %1457 = vmatprep.subr.bf16.mxu1 %v1929_v0  ;;  %v622_v23 = vld [vmem:[#allocation10 + $0x38] sm:$0xff]  ;;  %v1440_v24 = vpack.c.bf16 %v528_v20, %v527_v19  ;;  %v530_v26 = vld [vmem:[#allocation8 + $0x48] sm:$0xff]  ;;  %v623_v28 = vld [vmem:[#allocation10 + $0x40] sm:$0xff]  ;;  %p1794_p4 = scmp.ne.s32.totalorder %s1044_s8, %s1793_s9 }
  0xdc   : > { %v1464_v27 = vpack.c.bf16 %v622_v23, %v621_v22  ;;  %v624_v29 = vld [vmem:[#allocation10 + $0x48] sm:$0xff]  ;;  %v1443_v30 = vpack.c.bf16 %v530_v26, %v529_v25  ;;  %v531_v31 = vld [vmem:[#allocation8 + $0x50] sm:$0xff]  ;;  %v532_v32 = vld [vmem:[#allocation8 + $0x58] sm:$0xff] }
  0xdd   : > { %1435 = vmatpush3.bf16.msra.mxu0 %v1434_v11  ;;  %v1467_v33 = vpack.c.bf16 %v624_v29, %v623_v28  ;;  %v625_v34 = vld [vmem:[#allocation10 + $0x50] sm:$0xff]  ;;  %v626_v35 = vld [vmem:[#allocation10 + $0x58] sm:$0xff]  ;;  %v1446_v36 = vpack.c.bf16 %v532_v32, %v531_v31  ;;  %v533_v37 = vld [vmem:[#allocation8 + $0x60] sm:$0xff]  ;;  %s1256_s27 = sshll.u32 %s2492_s13, 7  ;;  %p2495_p7 = scmp.ne.s32.totalorder %s2493_s28, 0 }
  0xde   : > { %1436 = vmatprep.subr.bf16.mxu0 %v1929_v0  ;;  %1459 = vmatpush3.bf16.msra.mxu1 %v1458_v15  ;;  %v534_v38 = vld [vmem:[#allocation8 + $0x68] sm:$0xff]  ;;  %v1470_v39 = vpack.c.bf16 %v626_v35, %v625_v34  ;;  %v627_v40 = vld [vmem:[#allocation10 + $0x60] sm:$0xff]  ;;  %v535_v43 = vld [vmem:[#allocation8 + $0x70] sm:$0xff]  ;;  %s2337_s11 = scalar_lea.hbm %s2494_s24, %s1256_s27 }
  0xdf   : > { %1460 = vmatprep.subr.bf16.mxu1 %v1929_v0  ;;  %v628_v41 = vld [vmem:[#allocation10 + $0x68] sm:$0xff]  ;;  %v1449_v42 = vpack.c.bf16 %v534_v38, %v533_v37  ;;  %v536_v44 = vld [vmem:[#allocation8 + $0x78] sm:$0xff]  ;;  %v629_v46 = vld [vmem:[#allocation10 + $0x70] sm:$0xff]  ;;  %p1795_p3 = pnand %p1794_p4, %p2495_p7 }
  0xe0   : > { %v1473_v45 = vpack.c.bf16 %v628_v41, %v627_v40  ;;  %v630_v47 = vld [vmem:[#allocation10 + $0x78] sm:$0xff]  ;;  %v1452_v48 = vpack.c.bf16 %v536_v44, %v535_v43  ;;  %v614_v51 = vld [vmem:[%s447_s29] sm:$0xff]  ;;  %v711_v54 = vld [vmem:[#allocation11 + $0x10] sm:$0xff]  ;;  %s1797_s29 = sshll.u32 %s1932_s23, 4  ;;  %s1798_s29 = int_to_ptr.vmem [resolvable:$false] %s1797_s29 }
  0xe1   : > { %1438 = vmatpush3.bf16.msra.mxu0 %v1437_v18  ;;  %v1476_v49 = vpack.c.bf16 %v630_v47, %v629_v46  ;;  %v520_v50 = vld [vmem:[%s438_s16] sm:$0xff]  ;;  %v709_v52 = vld [vmem:[#allocation11] sm:$0xff]  ;;  %v710_v53 = vld [vmem:[#allocation11 + $0x8] sm:$0xff]  ;;  %s1015_s16 = scalar_lea.sflag [#allocation15], %s2249_s3  ;;  %p1796_p1 = pneg %p1795_p3 }
  0xe2   : > { %1439 = vmatprep.subr.bf16.mxu0 %v1929_v0  ;;  %1462 = vmatpush3.bf16.msra.mxu1 %v1461_v21  ;;  %v1479_v55 = vpack.c.bf16 %v710_v53, %v709_v52  ;;  %v712_v56 = vld [vmem:[#allocation11 + $0x18] sm:$0xff]  ;;  %v713_v58 = vld [vmem:[#allocation11 + $0x20] sm:$0xff]  ;;  %v714_v59 = vld [vmem:[#allocation11 + $0x28] sm:$0xff]  ;;  %p1800_p13 = scmp.lt.s32.totalorder %s1044_s8, %s1798_s29 }
  0xe3   : > { %1463 = vmatprep.subr.bf16.mxu1 %v1929_v0  ;;  %v1482_v57 = vpack.c.bf16 %v712_v56, %v711_v54  ;;  %v1485_v60 = vpack.c.bf16 %v714_v59, %v713_v58  ;;  %v715_v61 = vld [vmem:[#allocation11 + $0x30] sm:$0xff]  ;;  %v716_v62 = vld [vmem:[#allocation11 + $0x38] sm:$0xff]  ;;  %v717_v2 = vld [vmem:[#allocation11 + $0x40] sm:$0xff] }
  0xe4   : > { %v1488_v63 = vpack.c.bf16 %v716_v62, %v715_v61  ;;  %v718_v3 = vld [vmem:[#allocation11 + $0x48] sm:$0xff]  ;;  %v719_v5 = vld [vmem:[#allocation11 + $0x50] sm:$0xff]  ;;  %v720_v6 = vld [vmem:[#allocation11 + $0x58] sm:$0xff] }
  0xe5   : > { %1441 = vmatpush3.bf16.msra.mxu0 %v1440_v24  ;;  %v1491_v4 = vpack.c.bf16 %v718_v3, %v717_v2  ;;  %v1494_v7 = vpack.c.bf16 %v720_v6, %v719_v5  ;;  %v721_v8 = vld [vmem:[#allocation11 + $0x60] sm:$0xff]  ;;  %v722_v9 = vld [vmem:[#allocation11 + $0x68] sm:$0xff]  ;;  %v723_v11 = vld [vmem:[#allocation11 + $0x70] sm:$0xff] }
  0xe6   : > { %1442 = vmatprep.subr.bf16.mxu0 %v1929_v0  ;;  %1465 = vmatpush3.bf16.msra.mxu1 %v1464_v27  ;;  %v1497_v10 = vpack.c.bf16 %v722_v9, %v721_v8  ;;  %v724_v12 = vld [vmem:[#allocation11 + $0x78] sm:$0xff]  ;;  %v1250_v15 = vld [vmem:[%s2416_s4] ss:$0 sm:$0xff]  ;;  %v873_v27 = vlaneseq }
  0xe7   : > { %1466 = vmatprep.subr.bf16.mxu1 %v1929_v0  ;;  %v1500_v13 = vpack.c.bf16 %v724_v12, %v723_v11  ;;  %v708_v14 = vld [vmem:[%s456_s20] sm:$0xff]  ;;  %s1799_s20 = scalar_lea.vmem %s1798_s29, 256 }
  0xe8   : > { %v1251_v19 = vld [vmem:[%s2490_s22] ss:$0 sm:$0xff]  ;;  %v874_v28 = vshrl.u32 %v873_v27, 7  ;;  %v877_v29 = vand.u32 127, %v873_v27  ;;  %p1801_p6 = scmp.lt.s32.totalorder %s1799_s20, %s1793_s9 }
  0xe9   : > { %1444 = vmatpush3.bf16.msra.mxu0 %v1443_v30 }
  0xea   : > { %1445 = vmatprep.subr.bf16.mxu0 %v1929_v0  ;;  %1468 = vmatpush3.bf16.msra.mxu1 %v1467_v33  ;;  %vm880_vm1 = vcmp.le.s32.totalorder %v874_v28, %v877_v29  ;;  %p1802_p0 = por %p1801_p6, %p1800_p13 }
  0xeb   : > { %1469 = vmatprep.subr.bf16.mxu1 %v1929_v0 }
  0xec   : > { %p1803_p12 = pnand %p1802_p0, %p1796_p1 }
  0xed   : > { %1447 = vmatpush3.bf16.msra.mxu0 %v1446_v36 }
  0xee   : > { %1448 = vmatprep.subr.bf16.mxu0 %v1929_v0  ;;  %1471 = vmatpush3.bf16.msra.mxu1 %v1470_v39 }
  0xef   : > { %1472 = vmatprep.subr.bf16.mxu1 %v1929_v0 }
  0xf1   : > { %1450 = vmatpush3.bf16.msra.mxu0 %v1449_v42 }
  0xf2   : > { %1451 = vmatprep.subr.bf16.mxu0 %v1929_v0  ;;  %1474 = vmatpush3.bf16.msra.mxu1 %v1473_v45 }
  0xf3   : > { %1475 = vmatprep.subr.bf16.mxu1 %v1929_v0 }
  0xf5   : > { %1453 = vmatpush3.bf16.msra.mxu0 %v1452_v48 }
  0xf6   : > { %1477 = vmatpush3.bf16.msra.mxu1 %v1476_v49  ;;  %1478 = vmatprep.subr.bf16.mxu0 %v1929_v0 }
  0xf7   : > { %1420 = vmatprep.subr.mxu1 %v1931_v1 }
  0xf8   : > { %1348 = vmatmul.mubr.f32.vlgmr.msra.gmra.mrb[0].mxu0 %v520_v50 }
  0xf9   : > { %1383 = vmatmul.mubr.f32.vlgmr.msra.gmra.mrb[0].mxu1 %v614_v51  ;;  %1417 = vmatprep.mubr.msk.f32.mxu0 %vm1930_vm0, %v1931_v1 }
  0xfa   : > { %1422 = vmatprep.mubr.msk.f32.mxu1 %vm1930_vm0, %v1931_v1  ;;  %1480 = vmatpush3.bf16.msra.mxu0 %v1479_v55 }
  0xfb   : > { %1481 = vmatprep.subr.bf16.mxu0 %v1929_v0 }
  0xfe   : > { %1483 = vmatpush3.bf16.msra.mxu0 %v1482_v57 }
  0xff   : > { %1484 = vmatprep.subr.bf16.mxu0 %v1929_v0 }
 0x102   : > { %1486 = vmatpush3.bf16.msra.mxu0 %v1485_v60 }
 0x103   : > { %1487 = vmatprep.subr.bf16.mxu0 %v1929_v0 }
 0x106   : > { %1489 = vmatpush3.bf16.msra.mxu0 %v1488_v63 }
 0x107   : > { %1490 = vmatprep.subr.bf16.mxu0 %v1929_v0 }
 0x10a   : > { %1492 = vmatpush3.bf16.msra.mxu0 %v1491_v4 }
 0x10b   : > { %1493 = vmatprep.subr.bf16.mxu0 %v1929_v0 }
 0x10e   : > { %1495 = vmatpush3.bf16.msra.mxu0 %v1494_v7 }
 0x10f   : > { %1496 = vmatprep.subr.bf16.mxu0 %v1929_v0 }
 0x112   : > { %1498 = vmatpush3.bf16.msra.mxu0 %v1497_v10 }
 0x113   : > { %1499 = vmatprep.subr.bf16.mxu0 %v1929_v0  ;;  %v1252_v0 = vld [vmem:[%s2491_s12] ss:$0 sm:$0xff] }
 0x116   : > { %1501 = vmatpush3.bf16.msra.mxu0 %v1500_v13 }
 0x119   : > { %1418 = vmatmul.mubr.f32.vlgmr.msra.gmra.mrb[2].mxu0 %v708_v14 }
 0x1cb   : > { %v610_v16 = vpop.f32.mrb[0].mxu0 }
 0x1cc   : > { %v611_v17 = vadd.f32 %v1250_v15, %v610_v16  ;;  %v1349_v18 = vpop.f32.mrb[1].mxu0  ;;  %v704_v20 = vpop.f32.mrb[0].mxu1 }
 0x1cd   : > { %v1384_v21 = vpop.f32.mrb[1].mxu1  ;;  %v705_v23 = vadd.f32 %v1251_v19, %v704_v20 }
 0x1ce   : > { %v802_v22 = vmul.f32 0.17677669, %v611_v17 }
 0x1d0   : > { %1421 = vmatpush3.xpose.msra.mxu1 %v802_v22 }
 0x1d1   : > { %1425 = vmatprep.subr.mxu1 %v1931_v1 }
 0x1d3   : > { %1423 = vmatmul.mubr.f32.vlgmr.msra.gmra.mrb[2].mxu1 %v705_v23 }
 0x1d4   : > { %1427 = vmatprep.mubr.msk.f32.mxu1 %vm1930_vm0, %v1931_v1 }
 0x1ec   : > { %v798_v24 = vpop.f32.mrb[2].mxu0 }
 0x1ed   : > { %v799_v25 = vadd.f32 %v1252_v0, %v798_v24  ;;  %v1419_v26 = vpop.f32.mrb[3].mxu0 }
 0x1ef   : > { %1426 = vmatpush3.msra.mxu1 %v799_v25 }
 0x2a6   : > { %v869_v30 = vpop.f32.mrb[2].mxu1 }
 0x2a7   : > { %v881_v31 = vsel %vm880_vm1, %v869_v30, -10000000.0  ;;  %v1424_v32 = vpop.f32.mrb[3].mxu1 }
 0x2a8   : > { %v883_v33 = vsel %vm882_vm2, %v881_v31, -inf }
 0x2a9   : > { %v884_v34 = vrot.slane %v883_v33, 4 }
 0x2ab   : > { %v885_v1 = vmax.f32 %v883_v33, %v884_v34 }
 0x2ad   : > { %v886_v35 = vrot.slane %v885_v1, 2 }
 0x2af   : > { %v887_v36 = vmax.f32 %v885_v1, %v886_v35 }
 0x2b1   : > { %v888_v37 = vrot.slane %v887_v36, 1 }
 0x2b3   : > { %v889_v38 = vmax.f32 %v887_v36, %v888_v37 }
 0x2b5   : > { %v890_v39 = vsub.f32 %v881_v31, %v889_v38 }
 0x2b7   : > { %v891_v40 = vmul.f32 1.442695, %v890_v39 }
 0x2b9   : > { %1615 = vpow2.f32 %v891_v40 }
 0x2c3   : > { %v1616_v41 = vpop.eup %1615 }
 0x2c4   : > { %v893_v42 = vsel %vm882_vm2, %v1616_v41, 0.0 }
 0x2c5   : > { %v894_v43 = vrot.slane %v893_v42, 4 }
 0x2c7   : > { %v895_v44 = vadd.f32 %v894_v43, %v893_v42 }
 0x2c9   : > { %v896_v45 = vrot.slane %v895_v44, 2 }
 0x2cb   : > { %v897_v46 = vadd.f32 %v896_v45, %v895_v44 }
 0x2cd   : > { %v898_v47 = vrot.slane %v897_v46, 1 }
 0x2cf   : > { %v899_v48 = vadd.f32 %v898_v47, %v897_v46 }
 0x2d1   : > { %1617 = vrcp.f32 %v899_v48 }
 0x2db   : > { %v1618_v49 = vpop.eup %1617 }
 0x2dc   : > { %v901_v50 = vmul.f32 %v1618_v49, %v1616_v41 }
 0x2de   : > { %903 = vxpose.xlu0.b32.start.end [1/1] (short) (narrow) %v901_v50, 8  ;;  %902 = vst.msk [vmem:[%s519_s10] sm:$0xff] %vm882_vm2, %v901_v50 }
 0x35e   : > { %v919_v51 = vpop.trf.xlu0 }
 0x35f   : > { %1428 = vmatmul.mubr.msk.f32.vlgmr.msra.gmra.mrb[4].mxu1 %vm882_vm2, %v919_v51 }
 0x360   : > { %1806 = shalt.err (!%p1803_p12)
}
 0x361   : > { %s1807_s19 = scalar_lea.hbm %s2337_s11, 128  ;;  %s1811_s18 = scalar_lea.hbm %s2494_s24, 256 }
 0x362   : > { %p1808_p8 = scmp.ne.s32.totalorder %s2337_s11, %s1807_s19  ;;  %p1812_p5 = scmp.lt.u32.totalorder %s2337_s11, %s2494_s24 }
 0x363   : > { %p1813_p9 = scmp.lt.u32.totalorder %s1811_s18, %s1807_s19  ;;  %p1815_p4 = scmp.lt.u32.totalorder %s1807_s19, %s2337_s11 }
 0x364   : > { %p1809_p11 = pnand %p1808_p8, %p2495_p7 }
 0x365   : > { %p1814_p2 = por %p1813_p9, %p1812_p5 }
 0x366   : > { %p1810_p10 = pneg %p1809_p11 }
 0x367   : > { %p1816_p3 = por %p1815_p4, %p1814_p2 }
 0x369   : > { %p1817_p1 = pnand %p1816_p3, %p1810_p10 }
 0x36b   : > { %1820 = shalt.err (!%p1817_p1)
}
 0x36c   : > { %1521 = dma.vmem_to_hbm [thread:$0]  (%p2495_p7), %s1044_s8, 128, %s2337_s11, %s1015_s16  }
 0x36d   : > { %s512_s17 = scalar_lea.vmem [#allocation13], %s2252_s6  ;;  %s2496_s30 = sld [smem:[#allocation34_spill]] }
 0x36e   : > { %s1029_s12 = sshll.u32 %s512_s17, 4  ;;  %s1010_s23 = scalar_lea.sflag [#allocation4], %s2249_s3  ;;  %s2358_s12 = int_to_ptr.vmem [resolvable:$true] %s1029_s12 }
 0x36f   : > { %s1821_s29 = scalar_lea.vmem %s2358_s12, 128  ;;  %s1933_s6 = smov [#allocation13]  }
 0x370   : > { %p1822_p13 = scmp.ne.s32.totalorder %s2358_s12, %s1821_s29  ;;  %s1825_s11 = sshll.u32 %s1933_s6, 4  ;;  %s1826_s11 = int_to_ptr.vmem [resolvable:$false] %s1825_s11 }
 0x371   : > { %s1827_s13 = scalar_lea.vmem %s1826_s11, 256  ;;  %p1828_p12 = scmp.lt.s32.totalorder %s2358_s12, %s1826_s11 }
 0x372   : > { %p1823_p6 = pnand %p1822_p13, %p2495_p7  ;;  %p1829_p8 = scmp.lt.s32.totalorder %s1827_s13, %s1821_s29 }
 0x373   : > { %s2365_s9 = scalar_lea.hbm %s2496_s30, %s1256_s27 }
 0x374   : > { %p1824_p0 = pneg %p1823_p6  ;;  %p1830_p11 = por %p1829_p8, %p1828_p12 }
 0x376   : > { %p1831_p10 = pnand %p1830_p11, %p1824_p0 }
 0x432   : > { %v1004_v52 = vpop.f32.mrb[4].mxu1 }
 0x433   : > { %1008 = vst [vmem:[%s512_s17] sm:$0xff] %v1004_v52  ;;  %v1429_v53 = vpop.f32.mrb[5].mxu1 }
 0x434   : > { %1834 = shalt.err (!%p1831_p10)
}
 0x435   : > { %s1835_s3 = scalar_lea.hbm %s2365_s9, 128  ;;  %s1839_s16 = scalar_lea.hbm %s2496_s30, 256 }
 0x436   : > { %p1836_p5 = scmp.ne.s32.totalorder %s2365_s9, %s1835_s3  ;;  %p1840_p4 = scmp.lt.u32.totalorder %s2365_s9, %s2496_s30 }
 0x437   : > { %p1841_p3 = scmp.lt.u32.totalorder %s1839_s16, %s1835_s3  ;;  %p1843_p13 = scmp.lt.u32.totalorder %s1835_s3, %s2365_s9 }
 0x438   : > { %p1837_p9 = pnand %p1836_p5, %p2495_p7 }
 0x439   : > { %p1842_p1 = por %p1841_p3, %p1840_p4 }
 0x43a   : > { %p1838_p2 = pneg %p1837_p9 }
 0x43b   : > { %p1844_p6 = por %p1843_p13, %p1842_p1 }
 0x43d   : > { %p1845_p0 = pnand %p1844_p6, %p1838_p2 }
 0x43f   : > { %1848 = shalt.err (!%p1845_p0)
}
 0x440   : > { %1520 = dma.vmem_to_hbm [thread:$0]  (%p2495_p7), %s2358_s12, 128, %s2365_s9, %s1010_s23  }
 0x441 PF: > { %s2497_s21 = sld [smem:[#allocation22_spill]]  ;;  %s2498_s26 = sld [smem:[#allocation26_spill]] }
 0x442   : > { %s2499_s18 = sld [smem:[#allocation25_spill]] }
 0x447   : > { %s1055_s22 = sand.u32 1, %s2497_s21   ;;  %p2500_p12 = scmp.ne.s32.totalorder %s2498_s26, 0 }
 0x448   : > { %p2501_p8 = scmp.ge.s32.totalorder %s2499_s18, 2  ;;  %s1056_s1 = scalar_lea.sflag [#allocation4], %s1055_s22 }
 0x44a   : > { %p1545_p11 = pnand %p2501_p8, %p2500_p12 }
 0x44c   : > { %1890 = dma.done.wait (!%p1545_p11), %s1056_s1, 128  }
 0x44d   : > { %1892 = vsyncadd (!%p1545_p11), %s1056_s1, 4294967168  ;;  %s1065_s17 = scalar_lea.sflag [#allocation15], %s1055_s22 }
 0x44e   : > { %1894 = dma.done.wait (!%p1545_p11), %s1065_s17, 128  }
 0x44f   : > { %1896 = vsyncadd (!%p1545_p11), %s1065_s17, 4294967168  ;;  %s35_s18 = sadd.s32 1, %s2499_s18   ;;  %s2502_s28 = sld [smem:[#allocation29_spill]] }
 0x450   : > { %p32_p10 = scmp.ge.s32.totalorder %s35_s18, 4   ;;  %s2503_s16 = sld [smem:[#allocation24_spill]] }
 0x451   : > { %s2504_s17 = sld [smem:[#allocation27_spill]]  ;;  %s2505_s13 = smov %s1903_s14 }
 0x452   : > { %s2506_s14 = smov %s1907_s15  ;;  %34 = sbr.rel (!%p32_p10) target bundleno = 19 (0x13), region = 154 }
 0x455   : > { %s2507_s15 = smov %s2502_s28 }
 0x459   :  { %1070 = vsyncpa [#allocation3], 1 }
 0x45a   :  { %1072 = vsyncpa [#allocation3 + $0x1], 1 }
 0x45b   :  { %1073 = vsyncpa [#allocation6], 1 }
 0x45c   :  { %1075 = vsyncpa [#allocation6 + $0x1], 1 }
 0x45d   :  { %1076 = vsyncpa [#allocation9], 1 }
 0x45e   :  { %1077 = vsyncpa [#allocation12], 1 }
 0x45f   :  { %1078 = vsyncpa [#allocation4], 1 }
 0x460   :  { %1080 = vsyncpa [#allocation4 + $0x1], 1 }
 0x461   :  { %1081 = vsyncpa [#allocation15], 1 }
 0x462   :  { %1083 = vsyncpa [#allocation15 + $0x1], 1 }

</bundles_post_ra>
